<compile_context>
chip_gen: v5e
topology: v5e:2x2
jax: 0.10.0
libtpu: 0.0.40
codegen_flags: <defaults>
</compile_context>

<pallas_src>
import functools

import jax
import jax.numpy as jnp
from jax.experimental import pallas as pl
from jax.experimental.pallas import tpu as pltpu


def _round_up(x, m):
    return -(-x // m) * m


# Budget for in-kernel temporaries + double-buffered input blocks; chosen to
# fit v5e's 16 MiB default scoped VMEM (and well under v7x's 64 MiB physical).
_VMEM_TILE_BUDGET_BYTES = 12 * 1024 * 1024


def _select_tile(B, C, tile_b):
    """Pick the batch tile: big (amortize grid-step cost), >=2 tiles for
    mid-size B (v7x megacore), clamped to the VMEM temporary budget."""
    tile_b = int(tile_b)
    if B <= min(256, tile_b):
        return B                       # single block == full array extent
    # At least two grid steps so the "parallel" axis can shard across v7x's
    # two TensorCores; tile stays a multiple of 128 (lane-dense stores).
    tile = min(tile_b, _round_up(-(-B // 2), 128))
    tile = max(tile, 128)
    # VMEM clamp: ~12 live (c_pad, tile) f32 temporaries + 2 double-buffered
    # input blocks (budgeted at f32 even if the caller passes bf16).
    c_pad = _round_up(C, 8)
    per_col_bytes = (12 * c_pad + 2 * 2 * c_pad) * 4
    max_tile = max(128, (_VMEM_TILE_BUDGET_BYTES // per_col_bytes) // 128 * 128)
    return min(tile, max_tile)


def _ntd_loss_kernel(logits_ref, dg_ref, tgt_ref, out_ref, *,
                     tau, beta, batch, tile, needs_mask):
    """One batch tile. Classes on sublanes (axis 0), batch on lanes (axis 1).

    Writes a (1, tile) row of unnormalized per-column partial losses.
    Columns >= `batch` (garbage reads from the partial boundary block)
    contribute exactly 0 via the where-selects below.
    """
    x = logits_ref[...].astype(jnp.float32)      # (C, T)
    dg = dg_ref[...].astype(jnp.float32)         # (C, T)
    tgt = tgt_ref[...]                           # (1, T) int32

    C, T = x.shape
    cls = jax.lax.broadcasted_iota(jnp.int32, (C, T), 0)
    is_true = cls == tgt                         # (C, T)
    not_true = jnp.logical_not(is_true)

    if needs_mask:
        col = (pl.program_id(0) * tile
               + jax.lax.broadcasted_iota(jnp.int32, (1, T), 1))
        valid = col < batch                      # (1, T)
        true_valid = jnp.logical_and(is_true, valid)
        keep = jnp.logical_and(not_true, valid)
    else:
        true_valid = is_true
        keep = not_true

    inv_tau = jnp.float32(1.0 / tau)
    neg = jnp.float32(-1e30)

    # ---- CrossEntropy: full log-softmax along the class (sublane) axis ----
    m_full = jnp.max(x, axis=0, keepdims=True)            # (1, T)
    xm = x - m_full                                        # hoisted
    e_full = jnp.exp(xm)                                   # (C, T)
    s_full = jnp.sum(e_full, axis=0, keepdims=True)        # (1, T)
    lse_full = m_full + jnp.log(s_full)
    ce_col = jnp.sum(jnp.where(true_valid, lse_full - x, 0.0),
                     axis=0, keepdims=True)                # (1, T)

    # ---- student: log-softmax over the not-true classes of logits / tau ----
    if tau == 1.0:
        # Reuse the CE exponentials (saves a full-width exp pass on the EUP).
        s_nt = jnp.sum(jnp.where(is_true, 0.0, e_full), axis=0, keepdims=True)
        s_nt = jnp.maximum(s_nt, jnp.float32(1e-30))       # underflow guard
        log_p = xm - jnp.log(s_nt)
    else:
        xs = jnp.where(is_true, neg, x * inv_tau)
        ms = jnp.max(xs, axis=0, keepdims=True)
        xs_ms = xs - ms
        s_s = jnp.sum(jnp.exp(xs_ms), axis=0, keepdims=True)
        log_p = xs_ms - jnp.log(s_s)

    # ---- teacher: softmax over the not-true classes of dg_logits / tau ----
    xt = jnp.where(is_true, neg, dg * inv_tau)
    mt = jnp.max(xt, axis=0, keepdims=True)
    xt_mt = xt - mt                                        # hoisted (et, log_q)
    et = jnp.exp(xt_mt)
    st = jnp.sum(et, axis=0, keepdims=True)
    log_st = jnp.log(st)
    q = et * pl.reciprocal(st, approx=True)                # EUP approx rcp
    log_q = xt_mt - log_st

    # KLDivLoss(reduction='batchmean') numerator, per column (not-true only).
    kl_col = jnp.sum(jnp.where(keep, q * (log_q - log_p), 0.0),
                     axis=0, keepdims=True)                # (1, T)

    out_ref[...] = (ce_col
                    + jnp.float32(beta * tau * tau) * kl_col).astype(jnp.float32)


def ntd_loss(logits, targets, dg_logits, *, num_classes=10, tau=1.0, beta=1.0,
             tile_b=8192, pre_transposed=False):
    """NTD_Loss.forward.

    logits, dg_logits: (B, C) (or (C, B) with pre_transposed=True), f32 or bf16.
    targets: (B,) int.
    """
    if pre_transposed:
        x_t, dg_t = logits, dg_logits            # already (C, B): no relayout
        C, B = x_t.shape
    else:
        B, C = logits.shape
        # Single relayout pass per tensor; pass pre_transposed=True to avoid it
        # (e.g. keep the classifier matmul output in (C, B)).
        x_t = jnp.transpose(logits)              # (C, B)
        dg_t = jnp.transpose(dg_logits)          # (C, B)
    assert C == num_classes

    tgt = targets.astype(jnp.int32).reshape(1, B)

    tile = _select_tile(B, C, tile_b)
    n_tiles = -(-B // tile)
    needs_mask = (B % tile) != 0                 # only the last block is partial

    kernel = functools.partial(
        _ntd_loss_kernel, tau=float(tau), beta=float(beta),
        batch=B, tile=tile, needs_mask=needs_mask)

    itemsize = jnp.dtype(x_t.dtype).itemsize
    partials = pl.pallas_call(
        kernel,
        out_shape=jax.ShapeDtypeStruct((n_tiles, 1, tile), jnp.float32),
        grid=(n_tiles,),
        in_specs=[
            pl.BlockSpec((C, tile), lambda i: (0, i)),     # logits^T
            pl.BlockSpec((C, tile), lambda i: (0, i)),     # dg^T
            pl.BlockSpec((1, tile), lambda i: (0, i)),     # targets (lane-dense)
        ],
        out_specs=pl.BlockSpec((None, 1, tile), lambda i: (i, 0, 0)),
        compiler_params=pltpu.CompilerParams(
            dimension_semantics=("parallel",)),
        cost_estimate=pl.CostEstimate(
            flops=20 * n_tiles * tile * C,
            transcendentals=3 * n_tiles * tile * C,
            bytes_accessed=int(2 * B * C * itemsize + B * 4
                               + n_tiles * tile * 4),
        ),
    )(x_t, dg_t, tgt)

    # Final tiny reduction outside the kernel (CE mean + KL batchmean => / B).
    return jnp.sum(partials) / jnp.float32(B)


def _reference(logits, targets, dg_logits, num_classes, tau, beta):
    """Plain-JAX reference mirroring the PyTorch module (true gather)."""
    logits = logits.astype(jnp.float32)
    dg_logits = dg_logits.astype(jnp.float32)
    logp = jax.nn.log_softmax(logits, axis=1)
    ce = -jnp.mean(jnp.take_along_axis(logp, targets[:, None], axis=1))

    B, C = logits.shape
    idx = jnp.arange(C)[None, :]
    t = targets[:, None]
    order = jnp.argsort(jnp.where(idx == t, C, idx), axis=1)
    nt_idx = order[:, : C - 1]
    l_nt = jnp.take_along_axis(logits, nt_idx, axis=1)
    dg_nt = jnp.take_along_axis(dg_logits, nt_idx, axis=1)
    log_p = jax.nn.log_softmax(l_nt / tau, axis=1)
    q = jax.nn.softmax(dg_nt / tau, axis=1)
    kl = jnp.sum(q * (jnp.log(q) - log_p)) / B
    return ce + beta * (tau ** 2) * kl


if __name__ == "__main__":
    key = jax.random.PRNGKey(0)
    num_classes = 10

    # --- small case (module defaults, single tile, tau == 1 shared-exp path) ---
    B = 8
    k1, k2, k3 = jax.random.split(key, 3)
    logits = jax.random.normal(k1, (B, num_classes), dtype=jnp.float32)
    dg_logits = jax.random.normal(k2, (B, num_classes), dtype=jnp.float32)
    targets = jax.random.randint(k3, (B,), 0, num_classes, dtype=jnp.int32)

    loss = ntd_loss(logits, targets, dg_logits,
                    num_classes=num_classes, tau=1.0, beta=1.0)
    loss = jax.block_until_ready(loss)
    ref = _reference(logits, targets, dg_logits, num_classes, 1.0, 1.0)
    assert jnp.allclose(loss, ref, rtol=1e-3, atol=1e-3), (loss, ref)

    # --- gridded path: 2 tiles, partial boundary block (no input padding),
    #     tau != 1 general student branch ---
    B2, tau2, beta2 = 200, 2.0, 0.7
    k4, k5, k6 = jax.random.split(k1, 3)
    logits2 = jax.random.normal(k4, (B2, num_classes), dtype=jnp.float32)
    dg2 = jax.random.normal(k5, (B2, num_classes), dtype=jnp.float32)
    tgts2 = jax.random.randint(k6, (B2,), 0, num_classes, dtype=jnp.int32)

    loss2 = ntd_loss(logits2, tgts2, dg2, num_classes=num_classes,
                     tau=tau2, beta=beta2, tile_b=128)
    loss2 = jax.block_until_ready(loss2)
    ref2 = _reference(logits2, tgts2, dg2, num_classes, tau2, beta2)
    assert jnp.allclose(loss2, ref2, rtol=1e-3, atol=1e-3), (loss2, ref2)

    # --- bf16 inputs (half the HBM bytes for the dominant arrays) ---
    loss3 = ntd_loss(logits.astype(jnp.bfloat16), targets,
                     dg_logits.astype(jnp.bfloat16),
                     num_classes=num_classes, tau=1.5, beta=1.0)
    loss3 = jax.block_until_ready(loss3)
    ref3 = _reference(logits, targets, dg_logits, num_classes, 1.5, 1.0)
    assert jnp.isfinite(loss3)
    assert jnp.allclose(loss3, ref3, rtol=1e-1, atol=1e-1), (loss3, ref3)

    print("KERNEL_OK")
</pallas_src>

<mosaic_0001>
module attributes {stable_mosaic.version = 11 : i64} {
  func.func @_ntd_loss_kernel(%arg0: i32, %arg1: memref<10x8xf32, #tpu.memory_space<vmem>>, %arg2: memref<10x8xf32, #tpu.memory_space<vmem>>, %arg3: memref<1x8xi32, #tpu.memory_space<vmem>>, %arg4: memref<1x1x8xf32, #tpu.memory_space<vmem>>) attributes {dimension_semantics = [#tpu.dimension_semantics<parallel>], iteration_bounds = array<i64: 1>, scalar_prefetch = 0 : i64, scratch_operands = 0 : i64, tpu.core_type = #tpu.core_type<tc>, window_params = [{transform_indices = @transform_0, window_bounds = array<i64: 10, 8>}, {transform_indices = @transform_1, window_bounds = array<i64: 10, 8>}, {transform_indices = @transform_2, window_bounds = array<i64: 1, 8>}, {transform_indices = @transform_3, window_bounds = array<i64: 1, 1, 8>}]} {
    %c0 = arith.constant 0 : index
    %c0_0 = arith.constant 0 : index
    %0 = vector.load %arg1[%c0, %c0_0] : memref<10x8xf32, #tpu.memory_space<vmem>>, vector<10x8xf32>
    %c0_1 = arith.constant 0 : index
    %c0_2 = arith.constant 0 : index
    %1 = vector.load %arg2[%c0_1, %c0_2] : memref<10x8xf32, #tpu.memory_space<vmem>>, vector<10x8xf32>
    %c0_3 = arith.constant 0 : index
    %c0_4 = arith.constant 0 : index
    %2 = vector.load %arg3[%c0_3, %c0_4] : memref<1x8xi32, #tpu.memory_space<vmem>>, vector<1x8xi32>
    %3 = tpu.iota {dimensions = array<i32: 0>} : vector<10x8xi32>
    %4 = vector.broadcast %2 : vector<1x8xi32> to vector<10x8xi32>
    %5 = arith.cmpi eq, %3, %4 : vector<10x8xi32>
    %cst = arith.constant dense<true> : vector<10x8xi1>
    %6 = arith.xori %5, %cst : vector<10x8xi1>
    %cst_5 = arith.constant dense<0xFF800000> : vector<8xf32>
    %7 = vector.multi_reduction <maximumf>, %0, %cst_5 [0] : vector<10x8xf32> to vector<8xf32>
    %8 = vector.shape_cast %7 : vector<8xf32> to vector<1x8xf32>
    %9 = vector.broadcast %8 : vector<1x8xf32> to vector<10x8xf32>
    %10 = arith.subf %0, %9 : vector<10x8xf32>
    %11 = math.exp %10 : vector<10x8xf32>
    %cst_6 = arith.constant dense<0.000000e+00> : vector<8xf32>
    %12 = vector.multi_reduction <add>, %11, %cst_6 [0] : vector<10x8xf32> to vector<8xf32>
    %13 = vector.shape_cast %12 : vector<8xf32> to vector<1x8xf32>
    %14 = math.log %13 : vector<1x8xf32>
    %15 = arith.addf %8, %14 : vector<1x8xf32>
    %16 = vector.broadcast %15 : vector<1x8xf32> to vector<10x8xf32>
    %17 = arith.subf %16, %0 : vector<10x8xf32>
    %cst_7 = arith.constant 0.000000e+00 : f32
    %18 = vector.broadcast %cst_7 : f32 to vector<10x8xf32>
    %19 = arith.select %5, %17, %18 : vector<10x8xi1>, vector<10x8xf32>
    %cst_8 = arith.constant dense<0.000000e+00> : vector<8xf32>
    %20 = vector.multi_reduction <add>, %19, %cst_8 [0] : vector<10x8xf32> to vector<8xf32>
    %21 = vector.shape_cast %20 : vector<8xf32> to vector<1x8xf32>
    %cst_9 = arith.constant 0.000000e+00 : f32
    %22 = vector.broadcast %cst_9 : f32 to vector<10x8xf32>
    %23 = arith.select %5, %22, %11 : vector<10x8xi1>, vector<10x8xf32>
    %cst_10 = arith.constant dense<0.000000e+00> : vector<8xf32>
    %24 = vector.multi_reduction <add>, %23, %cst_10 [0] : vector<10x8xf32> to vector<8xf32>
    %25 = vector.shape_cast %24 : vector<8xf32> to vector<1x8xf32>
    %cst_11 = arith.constant 1.000000e-30 : f32
    %26 = vector.broadcast %cst_11 : f32 to vector<1x8xf32>
    %27 = arith.maximumf %25, %26 : vector<1x8xf32>
    %28 = math.log %27 : vector<1x8xf32>
    %29 = vector.broadcast %28 : vector<1x8xf32> to vector<10x8xf32>
    %30 = arith.subf %10, %29 : vector<10x8xf32>
    %cst_12 = arith.constant 1.000000e+00 : f32
    %31 = vector.broadcast %cst_12 : f32 to vector<10x8xf32>
    %32 = arith.mulf %1, %31 : vector<10x8xf32>
    %cst_13 = arith.constant -1.000000e+30 : f32
    %33 = vector.broadcast %cst_13 : f32 to vector<10x8xf32>
    %34 = arith.select %5, %33, %32 : vector<10x8xi1>, vector<10x8xf32>
    %cst_14 = arith.constant dense<0xFF800000> : vector<8xf32>
    %35 = vector.multi_reduction <maximumf>, %34, %cst_14 [0] : vector<10x8xf32> to vector<8xf32>
    %36 = vector.shape_cast %35 : vector<8xf32> to vector<1x8xf32>
    %37 = vector.broadcast %36 : vector<1x8xf32> to vector<10x8xf32>
    %38 = arith.subf %34, %37 : vector<10x8xf32>
    %39 = math.exp %38 : vector<10x8xf32>
    %cst_15 = arith.constant dense<0.000000e+00> : vector<8xf32>
    %40 = vector.multi_reduction <add>, %39, %cst_15 [0] : vector<10x8xf32> to vector<8xf32>
    %41 = vector.shape_cast %40 : vector<8xf32> to vector<1x8xf32>
    %42 = math.log %41 : vector<1x8xf32>
    %43 = tpu.reciprocal %41 {approx = true} : vector<1x8xf32> -> vector<1x8xf32>
    %44 = vector.broadcast %43 : vector<1x8xf32> to vector<10x8xf32>
    %45 = arith.mulf %39, %44 : vector<10x8xf32>
    %46 = vector.broadcast %42 : vector<1x8xf32> to vector<10x8xf32>
    %47 = arith.subf %38, %46 : vector<10x8xf32>
    %48 = arith.subf %47, %30 : vector<10x8xf32>
    %49 = arith.mulf %45, %48 : vector<10x8xf32>
    %cst_16 = arith.constant 0.000000e+00 : f32
    %50 = vector.broadcast %cst_16 : f32 to vector<10x8xf32>
    %51 = arith.select %6, %49, %50 : vector<10x8xi1>, vector<10x8xf32>
    %cst_17 = arith.constant dense<0.000000e+00> : vector<8xf32>
    %52 = vector.multi_reduction <add>, %51, %cst_17 [0] : vector<10x8xf32> to vector<8xf32>
    %53 = vector.shape_cast %52 : vector<8xf32> to vector<1x8xf32>
    %cst_18 = arith.constant 1.000000e+00 : f32
    %54 = vector.broadcast %cst_18 : f32 to vector<1x8xf32>
    %55 = arith.mulf %54, %53 : vector<1x8xf32>
    %56 = arith.addf %21, %55 : vector<1x8xf32>
    %c0_19 = arith.constant 0 : index
    %c0_20 = arith.constant 0 : index
    %c0_21 = arith.constant 0 : index
    %57 = vector.load %arg4[%c0_19, %c0_20, %c0_21] : memref<1x1x8xf32, #tpu.memory_space<vmem>>, vector<1x1x8xf32>
    %58 = vector.shape_cast %57 : vector<1x1x8xf32> to vector<1x8xf32>
    %59 = vector.shape_cast %56 : vector<1x8xf32> to vector<1x1x8xf32>
    tpu.vector_store %arg4[%c0_19, %c0_20, %c0_21], %59 {strides = array<i32>} : memref<1x1x8xf32, #tpu.memory_space<vmem>>, vector<1x1x8xf32>,
    return
  }
  func.func @transform_0(%arg0: i32) -> (i32, i32) {
    %c0_i32 = arith.constant 0 : i32
    %c0_i32_0 = arith.constant 0 : i32
    return %c0_i32, %arg0 : i32, i32
  }
  func.func @transform_1(%arg0: i32) -> (i32, i32) {
    %c0_i32 = arith.constant 0 : i32
    %c0_i32_0 = arith.constant 0 : i32
    return %c0_i32, %arg0 : i32, i32
  }
  func.func @transform_2(%arg0: i32) -> (i32, i32) {
    %c0_i32 = arith.constant 0 : i32
    %c0_i32_0 = arith.constant 0 : i32
    return %c0_i32, %arg0 : i32, i32
  }
  func.func @transform_3(%arg0: i32) -> (i32, i32, i32) {
    %c0_i32 = arith.constant 0 : i32
    %c0_i32_0 = arith.constant 0 : i32
    %c0_i32_1 = arith.constant 0 : i32
    return %arg0, %c0_i32, %c0_i32_0 : i32, i32, i32
  }
}

</mosaic_0001>

<bundles_post_ra>
// kernel: tpu_custom_call.1
= control target key start
LH: loop header
LB: loop body
LE: loop exit
PB: predicated region body
PF: predicated region fallthrough
CT: control target
= control target key end

     0   :  { %8 = vsyncpa [#allocation3], 0  ;;  %v20_v2 = vlaneseq  ;;  %vm28_vm0 = vcmask 64512   ;;  %vm30_vm1 = vcmask 58368   ;;  %vm198_vm4 = vmmov 1   ;;  %s313_s0 = inlined_call_operand.vmem [shape: f32[10,8], index: 0, kind: input, shape index: {}]   ;;  %s314_s1 = inlined_call_operand.vmem [shape: f32[10,8], index: 1, kind: input, shape index: {}]   ;;  %s315_s2 = inlined_call_operand.vmem [shape: s32[1,8], index: 2, kind: input, shape index: {}]   ;;  %s316_s3 = inlined_call_operand.hbm [shape: f32[1,1,8], index: 3, kind: output, shape index: {}]  }
   0x1   :  { %v223_v0 = vld [vmem:[%s313_s0] sm:$0xff]  ;;  %v228_v1 = vld [vmem:[%s313_s0 + $0x8] sm:$0x3]  ;;  %s144_s23 = sshll.u32 %s316_s3, 4  ;;  %vm135_vm7 = vcmask 57344   ;;  %s145_s23 = int_to_ptr.hbm [resolvable:$true] %s144_s23 }
   0x2   :  { %v17_v3 = vld [vmem:[%s314_s1] sm:$0xff]  ;;  %v233_v4 = vshrl.u32 %v20_v2, 7  ;;  %v29_v6 = vsel %vm28_vm0, %v223_v0, -inf  ;;  %v31_v7 = vsel %vm30_vm1, %v228_v1, -inf  ;;  %v18_v8 = vld [vmem:[%s314_s1 + $0x8] sm:$0x3] }
   0x3   :  { %v238_v5 = vld [vmem:[%s315_s2] ss:$0 sm:$0xff]  ;;  %v32_v10 = vmax.f32 %v29_v6, %v31_v7  ;;  %s199_s1 = smov [#allocation2]  }
   0x4   :  { %v248_v9 = vadd.s32 8, %v233_v4  ;;  %vm24_vm2 = vcmp.eq.s32.totalorder %v233_v4, %v238_v5  ;;  %s142_s2 = sshll.u32 %s199_s1, 4  ;;  %s143_s2 = int_to_ptr.vmem [resolvable:$true] %s142_s2 }
   0x5   :  { %v86_v11 = vsel %vm24_vm2, -1e+30, %v17_v3  ;;  %v33_v12 = vrot.slane %v32_v10, 4  ;;  %vm26_vm5 = vmxor %vm24_vm2, %vm198_vm4 }
   0x6   :  { %vm25_vm3 = vcmp.eq.s32.totalorder %v248_v9, %v238_v5  ;;  %v88_v13 = vsel %vm28_vm0, %v86_v11, -inf }
   0x7   :  { %v87_v14 = vsel %vm25_vm3, -1e+30, %v18_v8  ;;  %v34_v15 = vmax.f32 %v32_v10, %v33_v12  ;;  %vm27_vm6 = vmxor %vm25_vm3, %vm198_vm4 }
   0x8   :  { %v89_v16 = vsel %vm30_vm1, %v87_v14, -inf }
   0x9   :  { %v90_v17 = vmax.f32 %v88_v13, %v89_v16  ;;  %v35_v18 = vrot.slane %v34_v15, 2 }
   0xb   :  { %v91_v19 = vrot.slane %v90_v17, 4  ;;  %v36_v20 = vmax.f32 %v34_v15, %v35_v18 }
   0xd   :  { %v92_v21 = vmax.f32 %v90_v17, %v91_v19  ;;  %v37_v22 = vrot.slane %v36_v20, 1 }
   0xf   :  { %v93_v23 = vrot.slane %v92_v21, 2  ;;  %v38_v24 = vmax.f32 %v36_v20, %v37_v22 }
  0x11   :  { %v94_v25 = vmax.f32 %v92_v21, %v93_v23  ;;  %v263_v26 = vsub.f32 %v223_v0, %v38_v24  ;;  %v266_v27 = vsub.f32 %v228_v1, %v38_v24 }
  0x13   :  { %v95_v28 = vrot.slane %v94_v25, 1  ;;  %v41_v29 = vmul.f32 1.442695, %v263_v26  ;;  %v43_v30 = vmul.f32 1.442695, %v266_v27 }
  0x15   :  { %v96_v31 = vmax.f32 %v94_v25, %v95_v28  ;;  %156 = vpow2.f32 %v41_v29 }
  0x16   :  { %158 = vpow2.f32 %v43_v30 }
  0x17   :  { %v270_v32 = vsub.f32 %v86_v11, %v96_v31  ;;  %v272_v33 = vsub.f32 %v87_v14, %v96_v31 }
  0x19   :  { %v99_v34 = vmul.f32 1.442695, %v270_v32  ;;  %v101_v35 = vmul.f32 1.442695, %v272_v33 }
  0x1b   :  { %160 = vpow2.f32 %v99_v34  ;;  %v157_v36 = vpop.eup %156 }
  0x1c   :  { %162 = vpow2.f32 %v101_v35  ;;  %v159_v37 = vpop.eup %158  ;;  %v45_v38 = vsel %vm28_vm0, %v157_v36, 0.0  ;;  %v70_v39 = vsel %vm24_vm2, 0.0, %v157_v36 }
  0x1d   :  { %v46_v40 = vsel %vm30_vm1, %v159_v37, 0.0  ;;  %v71_v41 = vsel %vm25_vm3, 0.0, %v159_v37  ;;  %v72_v42 = vsel %vm28_vm0, %v70_v39, 0.0 }
  0x1e   :  { %v47_v43 = vadd.f32 %v46_v40, %v45_v38  ;;  %v73_v44 = vsel %vm30_vm1, %v71_v41, 0.0 }
  0x1f   :  { %v74_v45 = vadd.f32 %v73_v44, %v72_v42 }
  0x20   :  { %v48_v47 = vrot.slane %v47_v43, 4 }
  0x21   :  { %v161_v46 = vpop.eup %160  ;;  %v75_v49 = vrot.slane %v74_v45, 4 }
  0x22   :  { %v163_v48 = vpop.eup %162  ;;  %v103_v50 = vsel %vm28_vm0, %v161_v46, 0.0  ;;  %v49_v51 = vadd.f32 %v48_v47, %v47_v43 }
  0x23   :  { %v104_v52 = vsel %vm30_vm1, %v163_v48, 0.0  ;;  %v76_v53 = vadd.f32 %v75_v49, %v74_v45 }
  0x24   :  { %v105_v54 = vadd.f32 %v104_v52, %v103_v50  ;;  %v50_v55 = vrot.slane %v49_v51, 2 }
  0x25   :  { %v77_v56 = vrot.slane %v76_v53, 2 }
  0x26   :  { %v106_v57 = vrot.slane %v105_v54, 4  ;;  %v51_v58 = vadd.f32 %v50_v55, %v49_v51 }
  0x27   :  { %v78_v59 = vadd.f32 %v77_v56, %v76_v53 }
  0x28   :  { %v107_v60 = vadd.f32 %v106_v57, %v105_v54  ;;  %v52_v61 = vrot.slane %v51_v58, 1 }
  0x29   :  { %v79_v62 = vrot.slane %v78_v59, 1 }
  0x2a   :  { %v108_v63 = vrot.slane %v107_v60, 2  ;;  %v53_v2 = vadd.f32 %v52_v61, %v51_v58 }
  0x2b   :  { %v80_v3 = vadd.f32 %v79_v62, %v78_v59 }
  0x2c   :  { %v109_v6 = vadd.f32 %v108_v63, %v107_v60  ;;  %164 = vlog2.f32 %v53_v2 }
  0x2d   :  { %v81_v7 = vmax.f32 %v80_v3, 1e-30 }
  0x2e   :  { %v110_v8 = vrot.slane %v109_v6, 1 }
  0x2f   :  { %166 = vlog2.f32 %v81_v7 }
  0x30   :  { %v111_v10 = vadd.f32 %v110_v8, %v109_v6 }
  0x32   :  { %168 = vlog2.f32 %v111_v10  ;;  %v165_v11 = vpop.eup %164 }
  0x33   :  { %170 = vrcp.f32 %v111_v10  ;;  %v55_v12 = vmul.f32 0.6931472, %v165_v11 }
  0x35   :  { %v167_v13 = vpop.eup %166  ;;  %v56_v14 = vadd.f32 %v55_v12, %v38_v24 }
  0x36   :  { %v83_v15 = vmul.f32 0.6931472, %v167_v13 }
  0x37   :  { %v57_v17 = vsub.f32 %v56_v14, %v223_v0  ;;  %v58_v18 = vsub.f32 %v56_v14, %v228_v1 }
  0x38   :  { %v169_v16 = vpop.eup %168  ;;  %v84_v20 = vsub.f32 %v263_v26, %v83_v15  ;;  %v85_v21 = vsub.f32 %v266_v27, %v83_v15 }
  0x39   :  { %v171_v19 = vpop.eup %170  ;;  %v113_v22 = vmul.f32 0.6931472, %v169_v16  ;;  %v59_v23 = vsel %vm24_vm2, %v57_v17, 0.0  ;;  %v60_v24 = vsel %vm25_vm3, %v58_v18, 0.0 }
  0x3a   :  { %v115_v25 = vmul.f32 %v171_v19, %v161_v46  ;;  %v116_v28 = vmul.f32 %v171_v19, %v163_v48  ;;  %v61_v0 = vsel %vm28_vm0, %v59_v23, 0.0  ;;  %v62_v1 = vsel %vm30_vm1, %v60_v24, 0.0 }
  0x3b   :  { %v117_v29 = vsub.f32 %v270_v32, %v113_v22  ;;  %v118_v26 = vsub.f32 %v272_v33, %v113_v22  ;;  %v63_v27 = vadd.f32 %v62_v1, %v61_v0 }
  0x3d   :  { %v119_v30 = vsub.f32 %v117_v29, %v84_v20  ;;  %v120_v31 = vsub.f32 %v118_v26, %v85_v21  ;;  %v64_v34 = vrot.slane %v63_v27, 4 }
  0x3f   :  { %v121_v35 = vmul.f32 %v119_v30, %v115_v25  ;;  %v122_v36 = vmul.f32 %v120_v31, %v116_v28  ;;  %v65_v37 = vadd.f32 %v64_v34, %v63_v27 }
  0x41   :  { %v123_v38 = vsel %vm26_vm5, %v121_v35, 0.0  ;;  %v124_v32 = vsel %vm27_vm6, %v122_v36, 0.0  ;;  %v66_v39 = vrot.slane %v65_v37, 2 }
  0x42   :  { %v125_v33 = vsel %vm28_vm0, %v123_v38, 0.0  ;;  %v126_v40 = vsel %vm30_vm1, %v124_v32, 0.0 }
  0x43   :  { %v127_v41 = vadd.f32 %v126_v40, %v125_v33  ;;  %v67_v4 = vadd.f32 %v66_v39, %v65_v37 }
  0x45   :  { %v128_v42 = vrot.slane %v127_v41, 4  ;;  %v68_v44 = vrot.slane %v67_v4, 1 }
  0x47   :  { %v129_v43 = vadd.f32 %v128_v42, %v127_v41  ;;  %v69_v5 = vadd.f32 %v68_v44, %v67_v4 }
  0x49   :  { %v130_v45 = vrot.slane %v129_v43, 2 }
  0x4b   :  { %v131_v46 = vadd.f32 %v130_v45, %v129_v43 }
  0x4d   :  { %v132_v9 = vrot.slane %v131_v46, 1 }
  0x4f   :  { %v133_v47 = vadd.f32 %v132_v9, %v131_v46 }
  0x51   :  { %v134_v48 = vadd.f32 %v133_v47, %v69_v5 }
  0x53   :  { %136 = vst.msk [vmem:[#allocation2] sm:$0x1] %vm135_vm7, %v134_v48 }
  0x54   :  { %147 = dma.vmem_to_hbm [thread:$0]  %s143_s2, 16, %s145_s23, [#allocation3]  }
  0x55   :  { %196 = dma.done.wait [#allocation3], 16  }
  0x56   :  { %197 = vsyncadd [#allocation3], 4294967280 }
  0x57   :  { %152 = vsyncpa [#allocation3], 1 }

</bundles_post_ra>
